<compile_context>
chip_gen: v7x
topology: tpu7x:2x2x1
jax: 0.10.0
libtpu: 0.0.40
codegen_flags: <defaults>
</compile_context>

<pallas_src>
import functools

import jax
import jax.numpy as jnp
from jax.experimental import pallas as pl
from jax.experimental.pallas import tpu as pltpu

LANES = 128          # TPU lane width
SUBLANES_BF16 = 16   # bf16 sublane packing


def _round_up(x, m):
    return (x + m - 1) // m * m


def pack_ensemble_params(weights, biases):
    """Pack (M, D, NC) weights / (M, NC) biases ONCE for the ensemble kernel.

    Returns:
      w_packed: (D, N_PAD) bf16; column m*NC + c holds W_m[:, c]; pads are 0.
      b_packed: (1, N_PAD) f32 in the same layout (pad lanes are masked in-kernel).
      c_packed: (N_PAD, OUT_PAD) f32 combine matrix with the 1/M ensemble mean
                folded in: C[m*NC + c, c] = 1/M (gathers + averages the models).
    """
    M, D, NC = weights.shape
    n_pad = max(LANES, _round_up(M * NC, LANES))
    out_pad = max(LANES, _round_up(NC, LANES))

    # (M, D, NC) -> (D, M*NC), tight class packing, then zero-pad to n_pad lanes.
    w = jnp.transpose(weights.astype(jnp.float32), (1, 0, 2)).reshape(D, M * NC)
    w_packed = jnp.zeros((D, n_pad), jnp.float32).at[:, : M * NC].set(w)
    w_packed = w_packed.astype(jnp.bfloat16)

    b = biases.astype(jnp.float32).reshape(1, M * NC)
    b_packed = jnp.zeros((1, n_pad), jnp.float32).at[:, : M * NC].set(b)

    rows = jnp.arange(M * NC)
    c_packed = (jnp.zeros((n_pad, out_pad), jnp.float32)
                .at[rows, rows % NC].set(1.0 / M))
    return w_packed, b_packed, c_packed


def _ensemble_kernel(x_ref, w_ref, b_ref, c_ref, o_ref, *, num_models, num_classes):
    # One bf16 matmul for all ensemble members, f32 accumulation:
    #   (TB, D) @ (D, N_PAD); model m's classes live in lanes [m*NC, (m+1)*NC).
    logits = jnp.dot(x_ref[...], w_ref[...],
                     preferred_element_type=jnp.float32) + b_ref[...]

    tb, n_pad = logits.shape
    lane = jax.lax.broadcasted_iota(jnp.int32, (tb, n_pad), 1)
    neg = jnp.float32(-1e30)

    probs = jnp.zeros((tb, n_pad), jnp.float32)
    # Statically unrolled masked softmax per ensemble member (M is small).
    # TODO(synk): for large M, switch to a models-on-sublanes layout (or
    # lax.fori_loop) so one max/exp/sum chain covers all members.
    for m in range(num_models):
        lo = m * num_classes
        hi = lo + num_classes
        mask = (lane >= lo) & (lane < hi)
        z = jnp.where(mask, logits, neg)
        z_max = jnp.max(z, axis=-1, keepdims=True)
        e = jnp.where(mask, jnp.exp(logits - z_max), 0.0)
        s = jnp.sum(e, axis=-1, keepdims=True)
        # Exact reciprocal: rows must sum to 1 (approx=True only holds ~1e-3).
        probs = probs + e * pl.reciprocal(s, approx=False)

    # Ensemble mean: tiny constant matmul gathers lane m*NC+c -> class lane c
    # and applies the 1/M factor; output is a dense, unmasked (TB, 128) store.
    o_ref[...] = jnp.dot(probs, c_ref[...], preferred_element_type=jnp.float32)


def ensemble_net_forward(x_nchw, w_packed, b_packed, c_packed, *,
                         num_models, num_classes):
    """x_nchw: [B, C, H, W]; packed params from pack_ensemble_params -> [B, NC]."""
    B = x_nchw.shape[0]
    D, n_pad = w_packed.shape
    out_pad = c_packed.shape[1]
    assert num_models * num_classes <= n_pad, "packed lane budget too small"
    assert num_classes <= out_pad, "num_classes exceeds packed output lanes"

    # Flatten in torch .view order and cast to the MXU-native bf16.
    x_flat = x_nchw.reshape(B, -1).astype(jnp.bfloat16)
    assert x_flat.shape[1] == D, (x_flat.shape, D)

    # Pad the batch (sublane) dim so vregs / MXU passes are fully occupied and
    # the output store is unmasked; padded rows are dropped after the call.
    b_pad = _round_up(max(B, SUBLANES_BF16), SUBLANES_BF16)
    tb = min(b_pad, 256)
    b_pad = _round_up(b_pad, tb)
    x_padded = jnp.zeros((b_pad, D), jnp.bfloat16).at[:B].set(x_flat)

    kernel = functools.partial(_ensemble_kernel,
                               num_models=num_models, num_classes=num_classes)

    out_padded = pl.pallas_call(
        kernel,
        out_shape=jax.ShapeDtypeStruct((b_pad, out_pad), jnp.float32),
        grid_spec=pltpu.PrefetchScalarGridSpec(
            num_scalar_prefetch=0,
            grid=(b_pad // tb,),
            in_specs=[
                pl.BlockSpec((tb, D), lambda i: (i, 0)),           # x tile
                pl.BlockSpec((D, n_pad), lambda i: (0, 0)),        # packed W (resident)
                pl.BlockSpec((1, n_pad), lambda i: (0, 0)),        # packed b
                pl.BlockSpec((n_pad, out_pad), lambda i: (0, 0)),  # combine matrix
            ],
            out_specs=pl.BlockSpec((tb, out_pad), lambda i: (i, 0)),
        ),
        compiler_params=pltpu.CompilerParams(
            # Batch tiles are independent -> v7x can split them across both
            # TensorCores once the batch is big enough; W/b/c blocks are
            # constant across the axis so each core fetches them once.
            dimension_semantics=("parallel",),
        ),
    )(x_padded, w_packed, b_packed, c_packed)

    # Drop batch padding and the padded class lanes (they carry 0 mass).
    return out_padded[:B, :num_classes]


def ensemble_net_reference(x_nchw, weights, biases):
    B = x_nchw.shape[0]
    M, D, NC = weights.shape
    x_flat = x_nchw.reshape(B, D).astype(jnp.float32)
    probs = [jax.nn.softmax(x_flat @ weights[m].astype(jnp.float32)
                            + biases[m].astype(jnp.float32), axis=1)
             for m in range(M)]
    return jnp.mean(jnp.stack(probs, axis=0), axis=0)


if __name__ == "__main__":
    # Small shapes consistent with the module's forward:
    # batch=2, in_channels=4, spatial=16x16, num_classes=8, 3 ensemble members.
    B, C, H, W = 2, 4, 16, 16
    NUM_CLASSES = 8
    NUM_MODELS = 3
    D = C * H * W

    key = jax.random.PRNGKey(0)
    kx, kw, kb = jax.random.split(key, 3)
    x = jax.random.normal(kx, (B, C, H, W), dtype=jnp.float32)
    weights = 0.05 * jax.random.normal(kw, (NUM_MODELS, D, NUM_CLASSES), dtype=jnp.float32)
    biases = 0.1 * jax.random.normal(kb, (NUM_MODELS, NUM_CLASSES), dtype=jnp.float32)

    # Pack ONCE (hoisted out of the per-forward path); reuse across calls.
    w_packed, b_packed, c_packed = pack_ensemble_params(weights, biases)

    out = ensemble_net_forward(x, w_packed, b_packed, c_packed,
                               num_models=NUM_MODELS, num_classes=NUM_CLASSES)
    out = jax.block_until_ready(out)

    ref = ensemble_net_reference(x, weights, biases)
    assert out.shape == (B, NUM_CLASSES), out.shape
    # bf16 matmul inputs -> compare against the f32 reference with a loose tol.
    assert jnp.allclose(out, ref, atol=1e-2, rtol=0.0), (out, ref)
    # Exact softmax reciprocal -> each row's ensemble mean sums to 1.
    assert jnp.allclose(jnp.sum(out, axis=-1), jnp.ones((B,)), atol=1e-3)

    # TODO(synk): the aug_ensemble=True branch (mean over batch before softmax)
    # is not implemented; only the standard voting path is covered.
    print("KERNEL_OK")
</pallas_src>

<mosaic_0001>
module attributes {stable_mosaic.version = 11 : i64} {
  func.func @_ensemble_kernel(%arg0: i32, %arg1: memref<16x1024xbf16, #tpu.memory_space<vmem>>, %arg2: memref<1024x128xbf16, #tpu.memory_space<vmem>>, %arg3: memref<1x128xf32, #tpu.memory_space<vmem>>, %arg4: memref<128x128xf32, #tpu.memory_space<vmem>>, %arg5: memref<16x128xf32, #tpu.memory_space<vmem>>) attributes {dimension_semantics = [#tpu.dimension_semantics<parallel>], iteration_bounds = array<i64: 1>, scalar_prefetch = 0 : i64, scratch_operands = 0 : i64, tpu.core_type = #tpu.core_type<tc>, window_params = [{transform_indices = @transform_0, window_bounds = array<i64: 16, 1024>}, {pipeline_mode = #tpu.pipeline_mode<synchronous>, transform_indices = @transform_1, window_bounds = array<i64: 1024, 128>}, {pipeline_mode = #tpu.pipeline_mode<synchronous>, transform_indices = @transform_2, window_bounds = array<i64: 1, 128>}, {pipeline_mode = #tpu.pipeline_mode<synchronous>, transform_indices = @transform_3, window_bounds = array<i64: 128, 128>}, {transform_indices = @transform_4, window_bounds = array<i64: 16, 128>}]} {
    %c0 = arith.constant 0 : index
    %c0_0 = arith.constant 0 : index
    %0 = vector.load %arg1[%c0, %c0_0] : memref<16x1024xbf16, #tpu.memory_space<vmem>>, vector<16x1024xbf16>
    %c0_1 = arith.constant 0 : index
    %c0_2 = arith.constant 0 : index
    %1 = vector.load %arg2[%c0_1, %c0_2] : memref<1024x128xbf16, #tpu.memory_space<vmem>>, vector<1024x128xbf16>
    %cst = arith.constant dense<0.000000e+00> : vector<16x128xf32>
    %2 = tpu.matmul %0, %1, %cst {dimension_numbers = #tpu.dot_dimension_numbers<[1], [0], [0], [1], [0, 0, 1, 1], [], []>} : vector<16x1024xbf16>, vector<1024x128xbf16>, vector<16x128xf32> -> vector<16x128xf32>
    %c0_3 = arith.constant 0 : index
    %c0_4 = arith.constant 0 : index
    %3 = vector.load %arg3[%c0_3, %c0_4] : memref<1x128xf32, #tpu.memory_space<vmem>>, vector<1x128xf32>
    %4 = vector.broadcast %3 : vector<1x128xf32> to vector<16x128xf32>
    %5 = arith.addf %2, %4 : vector<16x128xf32>
    %6 = tpu.iota {dimensions = array<i32: 1>} : vector<16x128xi32>
    %cst_5 = arith.constant 0.000000e+00 : f32
    %7 = vector.broadcast %cst_5 : f32 to vector<16x128xf32>
    %c0_i32 = arith.constant 0 : i32
    %8 = vector.broadcast %c0_i32 : i32 to vector<16x128xi32>
    %9 = arith.cmpi sge, %6, %8 : vector<16x128xi32>
    %c8_i32 = arith.constant 8 : i32
    %10 = vector.broadcast %c8_i32 : i32 to vector<16x128xi32>
    %11 = arith.cmpi slt, %6, %10 : vector<16x128xi32>
    %12 = arith.andi %9, %11 : vector<16x128xi1>
    %cst_6 = arith.constant -1.000000e+30 : f32
    %13 = vector.broadcast %cst_6 : f32 to vector<16x128xf32>
    %14 = arith.select %12, %5, %13 : vector<16x128xi1>, vector<16x128xf32>
    %cst_7 = arith.constant dense<0xFF800000> : vector<16xf32>
    %15 = vector.multi_reduction <maximumf>, %14, %cst_7 [1] : vector<16x128xf32> to vector<16xf32>
    %16 = vector.shape_cast %15 : vector<16xf32> to vector<16x1xf32>
    %17 = vector.broadcast %16 : vector<16x1xf32> to vector<16x128xf32>
    %18 = arith.subf %5, %17 : vector<16x128xf32>
    %19 = math.exp %18 : vector<16x128xf32>
    %cst_8 = arith.constant 0.000000e+00 : f32
    %20 = vector.broadcast %cst_8 : f32 to vector<16x128xf32>
    %21 = arith.select %12, %19, %20 : vector<16x128xi1>, vector<16x128xf32>
    %cst_9 = arith.constant dense<0.000000e+00> : vector<16xf32>
    %22 = vector.multi_reduction <add>, %21, %cst_9 [1] : vector<16x128xf32> to vector<16xf32>
    %23 = vector.shape_cast %22 : vector<16xf32> to vector<16x1xf32>
    %24 = tpu.reciprocal %23 : vector<16x1xf32> -> vector<16x1xf32>
    %25 = vector.broadcast %24 : vector<16x1xf32> to vector<16x128xf32>
    %26 = arith.mulf %21, %25 : vector<16x128xf32>
    %27 = arith.addf %7, %26 : vector<16x128xf32>
    %c8_i32_10 = arith.constant 8 : i32
    %28 = vector.broadcast %c8_i32_10 : i32 to vector<16x128xi32>
    %29 = arith.cmpi sge, %6, %28 : vector<16x128xi32>
    %c16_i32 = arith.constant 16 : i32
    %30 = vector.broadcast %c16_i32 : i32 to vector<16x128xi32>
    %31 = arith.cmpi slt, %6, %30 : vector<16x128xi32>
    %32 = arith.andi %29, %31 : vector<16x128xi1>
    %cst_11 = arith.constant -1.000000e+30 : f32
    %33 = vector.broadcast %cst_11 : f32 to vector<16x128xf32>
    %34 = arith.select %32, %5, %33 : vector<16x128xi1>, vector<16x128xf32>
    %cst_12 = arith.constant dense<0xFF800000> : vector<16xf32>
    %35 = vector.multi_reduction <maximumf>, %34, %cst_12 [1] : vector<16x128xf32> to vector<16xf32>
    %36 = vector.shape_cast %35 : vector<16xf32> to vector<16x1xf32>
    %37 = vector.broadcast %36 : vector<16x1xf32> to vector<16x128xf32>
    %38 = arith.subf %5, %37 : vector<16x128xf32>
    %39 = math.exp %38 : vector<16x128xf32>
    %cst_13 = arith.constant 0.000000e+00 : f32
    %40 = vector.broadcast %cst_13 : f32 to vector<16x128xf32>
    %41 = arith.select %32, %39, %40 : vector<16x128xi1>, vector<16x128xf32>
    %cst_14 = arith.constant dense<0.000000e+00> : vector<16xf32>
    %42 = vector.multi_reduction <add>, %41, %cst_14 [1] : vector<16x128xf32> to vector<16xf32>
    %43 = vector.shape_cast %42 : vector<16xf32> to vector<16x1xf32>
    %44 = tpu.reciprocal %43 : vector<16x1xf32> -> vector<16x1xf32>
    %45 = vector.broadcast %44 : vector<16x1xf32> to vector<16x128xf32>
    %46 = arith.mulf %41, %45 : vector<16x128xf32>
    %47 = arith.addf %27, %46 : vector<16x128xf32>
    %c16_i32_15 = arith.constant 16 : i32
    %48 = vector.broadcast %c16_i32_15 : i32 to vector<16x128xi32>
    %49 = arith.cmpi sge, %6, %48 : vector<16x128xi32>
    %c24_i32 = arith.constant 24 : i32
    %50 = vector.broadcast %c24_i32 : i32 to vector<16x128xi32>
    %51 = arith.cmpi slt, %6, %50 : vector<16x128xi32>
    %52 = arith.andi %49, %51 : vector<16x128xi1>
    %cst_16 = arith.constant -1.000000e+30 : f32
    %53 = vector.broadcast %cst_16 : f32 to vector<16x128xf32>
    %54 = arith.select %52, %5, %53 : vector<16x128xi1>, vector<16x128xf32>
    %cst_17 = arith.constant dense<0xFF800000> : vector<16xf32>
    %55 = vector.multi_reduction <maximumf>, %54, %cst_17 [1] : vector<16x128xf32> to vector<16xf32>
    %56 = vector.shape_cast %55 : vector<16xf32> to vector<16x1xf32>
    %57 = vector.broadcast %56 : vector<16x1xf32> to vector<16x128xf32>
    %58 = arith.subf %5, %57 : vector<16x128xf32>
    %59 = math.exp %58 : vector<16x128xf32>
    %cst_18 = arith.constant 0.000000e+00 : f32
    %60 = vector.broadcast %cst_18 : f32 to vector<16x128xf32>
    %61 = arith.select %52, %59, %60 : vector<16x128xi1>, vector<16x128xf32>
    %cst_19 = arith.constant dense<0.000000e+00> : vector<16xf32>
    %62 = vector.multi_reduction <add>, %61, %cst_19 [1] : vector<16x128xf32> to vector<16xf32>
    %63 = vector.shape_cast %62 : vector<16xf32> to vector<16x1xf32>
    %64 = tpu.reciprocal %63 : vector<16x1xf32> -> vector<16x1xf32>
    %65 = vector.broadcast %64 : vector<16x1xf32> to vector<16x128xf32>
    %66 = arith.mulf %61, %65 : vector<16x128xf32>
    %67 = arith.addf %47, %66 : vector<16x128xf32>
    %c0_20 = arith.constant 0 : index
    %c0_21 = arith.constant 0 : index
    %68 = vector.load %arg4[%c0_20, %c0_21] : memref<128x128xf32, #tpu.memory_space<vmem>>, vector<128x128xf32>
    %cst_22 = arith.constant dense<0.000000e+00> : vector<16x128xf32>
    %69 = tpu.matmul %67, %68, %cst_22 {dimension_numbers = #tpu.dot_dimension_numbers<[1], [0], [0], [1], [0, 0, 1, 1], [], []>} : vector<16x128xf32>, vector<128x128xf32>, vector<16x128xf32> -> vector<16x128xf32>
    %c0_23 = arith.constant 0 : index
    %c0_24 = arith.constant 0 : index
    %70 = vector.load %arg5[%c0_23, %c0_24] : memref<16x128xf32, #tpu.memory_space<vmem>>, vector<16x128xf32>
    tpu.vector_store %arg5[%c0_23, %c0_24], %69 {strides = array<i32>} : memref<16x128xf32, #tpu.memory_space<vmem>>, vector<16x128xf32>,
    return
  }
  func.func @transform_0(%arg0: i32) -> (i32, i32) {
    %c0_i32 = arith.constant 0 : i32
    %c0_i32_0 = arith.constant 0 : i32
    return %arg0, %c0_i32 : i32, i32
  }
  func.func @transform_1(%arg0: i32) -> (i32, i32) {
    %c0_i32 = arith.constant 0 : i32
    %c0_i32_0 = arith.constant 0 : i32
    %c0_i32_1 = arith.constant 0 : i32
    return %c0_i32, %c0_i32_0 : i32, i32
  }
  func.func @transform_2(%arg0: i32) -> (i32, i32) {
    %c0_i32 = arith.constant 0 : i32
    %c0_i32_0 = arith.constant 0 : i32
    %c0_i32_1 = arith.constant 0 : i32
    return %c0_i32, %c0_i32_0 : i32, i32
  }
  func.func @transform_3(%arg0: i32) -> (i32, i32) {
    %c0_i32 = arith.constant 0 : i32
    %c0_i32_0 = arith.constant 0 : i32
    %c0_i32_1 = arith.constant 0 : i32
    return %c0_i32, %c0_i32_0 : i32, i32
  }
  func.func @transform_4(%arg0: i32) -> (i32, i32) {
    %c0_i32 = arith.constant 0 : i32
    %c0_i32_0 = arith.constant 0 : i32
    return %arg0, %c0_i32 : i32, i32
  }
}

</mosaic_0001>

<bundles_post_ra>
// kernel: tpu_custom_call.1
= control target key start
LH: loop header
LB: loop body
LE: loop exit
PB: predicated region body
PF: predicated region fallthrough
CT: control target
= control target key end

     0   :  { %9 = vsyncpa [#allocation3], 0  ;;  %s1562_s0 = inlined_call_operand.hbm [shape: bf16[16,1024], index: 0, kind: input, shape index: {}]   ;;  %s1563_s1 = inlined_call_operand.hbm [shape: bf16[1024,128], index: 1, kind: input, shape index: {}]   ;;  %s1564_s2 = inlined_call_operand.vmem [shape: f32[1,128], index: 2, kind: input, shape index: {}]   ;;  %s1565_s3 = inlined_call_operand.hbm [shape: f32[128,128], index: 3, kind: input, shape index: {}]   ;;  %s1566_s4 = inlined_call_operand.hbm [shape: f32[16,128], index: 4, kind: output, shape index: {}]  }
   0x1   :  { %10 = vsyncpa [#allocation6], 0 }
   0x2   :  { %11 = vsyncpa [#allocation4], 0  ;;  %s1423_s15 = smov [#allocation5]   ;;  %s1329_s19 = scalar_lea.hbm %s1563_s1, 8192 }
   0x3   :  { %s29_s16 = sshll.u32 %s1423_s15, 4  ;;  %p1330_p0 = scmp.ne.s32.totalorder %s1563_s1, %s1329_s19  ;;  %s30_s16 = int_to_ptr.vmem [resolvable:$true] %s29_s16 }
   0x4   :  { %p1333_p1 = scmp.lt.u32.totalorder %s1329_s19, %s1563_s1 }
   0x6   :  { %p1335_p2 = pnand %p1333_p1, %p1330_p0 }
   0x8   :  { %1338 = shalt.err (!%p1335_p2)
}
   0x9   :  { %s1339_s24 = scalar_lea.vmem %s30_s16, 8192  ;;  %p1344_p4 = scmp.lt.s32.totalorder %s30_s16, %s30_s16 }
   0xa   :  { %p1340_p3 = scmp.ne.s32.totalorder %s30_s16, %s1339_s24  ;;  %p1345_p5 = scmp.lt.s32.totalorder %s1339_s24, %s1339_s24 }
   0xc   :  { %p1346_p6 = por %p1345_p5, %p1344_p4 }
   0xe   :  { %p1347_p7 = pnand %p1346_p6, %p1340_p3 }
  0x10   :  { %1350 = shalt.err (!%p1347_p7)
}
  0x11   :  { %s1424_s25 = smov 64   ;;  %s1425_s26 = smov 4  }
  0x12   :  { %35 = dma.hbm_to_vmem [thread:$0]  %s1563_s1, 8192, %s30_s16, [#allocation6], %s1424_s25, %s1424_s25, %s1425_s26  }
  0x13   :  { %s1426_s29 = smov [#allocation2]   ;;  %s1351_s7 = scalar_lea.hbm %s1562_s0, 1024 }
  0x14   :  { %s17_s30 = sshll.u32 %s1426_s29, 4  ;;  %p1352_p8 = scmp.ne.s32.totalorder %s1562_s0, %s1351_s7  ;;  %s18_s30 = int_to_ptr.vmem [resolvable:$true] %s17_s30 }
  0x15   :  { %p1355_p9 = scmp.lt.u32.totalorder %s1351_s7, %s1562_s0 }
  0x17   :  { %p1357_p10 = pnand %p1355_p9, %p1352_p8 }
  0x19   :  { %1360 = shalt.err (!%p1357_p10)
}
  0x1a   :  { %s1361_s12 = scalar_lea.vmem %s18_s30, 1024  ;;  %p1366_p12 = scmp.lt.s32.totalorder %s18_s30, %s18_s30 }
  0x1b   :  { %p1362_p11 = scmp.ne.s32.totalorder %s18_s30, %s1361_s12  ;;  %p1367_p13 = scmp.lt.s32.totalorder %s1361_s12, %s1361_s12 }
  0x1d   :  { %p1368_p0 = por %p1367_p13, %p1366_p12 }
  0x1f   :  { %p1369_p1 = pnand %p1368_p0, %p1362_p11 }
  0x21   :  { %1372 = shalt.err (!%p1369_p1)
}
  0x22   :  { %s1427_s1 = smov 512   ;;  %s1428_s13 = smov 32  }
  0x23   :  { %23 = dma.hbm_to_vmem [thread:$0]  %s1562_s0, 1024, %s18_s30, [#allocation3], %s1427_s1, %s1427_s1, %s1428_s13  }
  0x24   :  { %s1429_s16 = smov [#allocation7]   ;;  %s1373_s20 = scalar_lea.hbm %s1565_s3, 2048 }
  0x25   :  { %s43_s17 = sshll.u32 %s1429_s16, 4  ;;  %p1374_p2 = scmp.ne.s32.totalorder %s1565_s3, %s1373_s20  ;;  %s44_s17 = int_to_ptr.vmem [resolvable:$true] %s43_s17 }
  0x26   :  { %p1377_p3 = scmp.lt.u32.totalorder %s1373_s20, %s1565_s3 }
  0x28   :  { %p1379_p4 = pnand %p1377_p3, %p1374_p2 }
  0x2a   :  { %1382 = shalt.err (!%p1379_p4)
}
  0x2b   :  { %s1383_s25 = scalar_lea.vmem %s44_s17, 2048  ;;  %p1388_p6 = scmp.lt.s32.totalorder %s44_s17, %s44_s17 }
  0x2c   :  { %p1384_p5 = scmp.ne.s32.totalorder %s44_s17, %s1383_s25  ;;  %p1389_p7 = scmp.lt.s32.totalorder %s1383_s25, %s1383_s25 }
  0x2e   :  { %p1390_p8 = por %p1389_p7, %p1388_p6 }
  0x30   :  { %p1391_p9 = pnand %p1390_p8, %p1384_p5 }
  0x32   :  { %1394 = shalt.err (!%p1391_p9)
}
  0x33   :  { %s1430_s0 = smov 128   ;;  %s1431_s26 = smov 8  }
  0x34   :  { %49 = dma.hbm_to_vmem [thread:$0]  %s1565_s3, 2048, %s44_s17, [#allocation6], %s1430_s0, %s1430_s0, %s1431_s26  }
  0x35   :  { %1417 = dma.done.wait [#allocation3], 1024  }
  0x36   :  { %1418 = vsyncadd [#allocation3], 4294966272 }
  0x37   :  { %1419 = dma.done.wait [#allocation6], 10240  }
  0x38   :  { %1420 = vsyncadd [#allocation6], 4294957056  ;;  %v1241_v0 = vld [vmem:[#allocation5 + $0x40] sm:$0xff]   ;;  %v1245_v4 = vld [vmem:[#allocation5 + $0x48] sm:$0xff]  }
  0x39   :  { %v1242_v1 = vld [vmem:[#allocation5 + $0xc0] sm:$0xff]   ;;  %1058 = vmatprep.subr.bf16.mxu0 %v1241_v0  ;;  %v1246_v5 = vld [vmem:[#allocation5 + $0xc8] sm:$0xff]   ;;  %v1249_v8 = vld [vmem:[#allocation5 + $0x50] sm:$0xff]  }
  0x3a   :  { %v1243_v2 = vld [vmem:[#allocation5] sm:$0xff]   ;;  %1080 = vmatprep.subr.bf16.mxu1 %v1242_v1  ;;  %v1247_v6 = vld [vmem:[#allocation5 + $0x8] sm:$0xff]   ;;  %v1250_v9 = vld [vmem:[#allocation5 + $0xd0] sm:$0xff]  }
  0x3b   :  { %v1244_v3 = vld [vmem:[#allocation5 + $0x80] sm:$0xff]   ;;  %1059 = vmatpush3.bf16.msra.mxu0 %v1243_v2  ;;  %v1248_v7 = vld [vmem:[#allocation5 + $0x88] sm:$0xff]   ;;  %v1251_v10 = vld [vmem:[#allocation5 + $0x10] sm:$0xff]  }
  0x3c   :  { %1081 = vmatpush3.bf16.msra.mxu1 %v1244_v3  ;;  %1060 = vmatprep.subr.bf16.mxu0 %v1245_v4  ;;  %v1252_v11 = vld [vmem:[#allocation5 + $0x90] sm:$0xff]   ;;  %v1253_v12 = vld [vmem:[#allocation5 + $0x58] sm:$0xff]   ;;  %v1257_v16 = vld [vmem:[#allocation5 + $0x60] sm:$0xff]  }
  0x3d   :  { %1082 = vmatprep.subr.bf16.mxu1 %v1246_v5  ;;  %v1254_v13 = vld [vmem:[#allocation5 + $0xd8] sm:$0xff]   ;;  %v1258_v17 = vld [vmem:[#allocation5 + $0xe0] sm:$0xff]   ;;  %v1261_v20 = vld [vmem:[#allocation5 + $0x68] sm:$0xff]  }
  0x3e   :  { %v1255_v14 = vld [vmem:[#allocation5 + $0x18] sm:$0xff]   ;;  %v1259_v18 = vld [vmem:[#allocation5 + $0x20] sm:$0xff]   ;;  %v1262_v21 = vld [vmem:[#allocation5 + $0xe8] sm:$0xff]  }
  0x3f   :  { %1061 = vmatpush3.bf16.msra.mxu0 %v1247_v6  ;;  %v1256_v15 = vld [vmem:[#allocation5 + $0x98] sm:$0xff]   ;;  %v1260_v19 = vld [vmem:[#allocation5 + $0xa0] sm:$0xff]   ;;  %v1263_v22 = vld [vmem:[#allocation5 + $0x28] sm:$0xff]  }
  0x40   :  { %1083 = vmatpush3.bf16.msra.mxu1 %v1248_v7  ;;  %1062 = vmatprep.subr.bf16.mxu0 %v1249_v8  ;;  %v1264_v23 = vld [vmem:[#allocation5 + $0xa8] sm:$0xff]   ;;  %v1265_v24 = vld [vmem:[#allocation5 + $0x70] sm:$0xff]   ;;  %v1269_v28 = vld [vmem:[#allocation5 + $0x78] sm:$0xff]  }
  0x41   :  { %1084 = vmatprep.subr.bf16.mxu1 %v1250_v9  ;;  %v1266_v25 = vld [vmem:[#allocation5 + $0xf0] sm:$0xff]   ;;  %v1270_v29 = vld [vmem:[#allocation5 + $0xf8] sm:$0xff]   ;;  %v60_v32 = vld [vmem:[#allocation2] sm:$0xff] }
  0x42   :  { %v1267_v26 = vld [vmem:[#allocation5 + $0x30] sm:$0xff]   ;;  %v1271_v30 = vld [vmem:[#allocation5 + $0x38] sm:$0xff]   ;;  %v64_v33 = vld [vmem:[#allocation2 + $0x20] sm:$0xff] }
  0x43   :  { %1063 = vmatpush3.bf16.msra.mxu0 %v1251_v10  ;;  %v1268_v27 = vld [vmem:[#allocation5 + $0xb0] sm:$0xff]   ;;  %v1272_v31 = vld [vmem:[#allocation5 + $0xb8] sm:$0xff]   ;;  %v61_v34 = vld [vmem:[#allocation2 + $0x8] sm:$0xff]  ;;  %v986_v35 = vcombine.low %v60_v32, %v64_v33  ;;  %v987_v36 = vcombine.high %v60_v32, %v64_v33  ;;  %v791_v33 = vlaneseq }
  0x44   :  { %1085 = vmatpush3.bf16.msra.mxu1 %v1252_v11  ;;  %1064 = vmatprep.subr.bf16.mxu0 %v1253_v12  ;;  %v65_v37 = vld [vmem:[#allocation2 + $0x28] sm:$0xff]  ;;  %v1273_v40 = vld [vmem:[#allocation5 + $0x140] sm:$0xff]   ;;  %v1281_v48 = vld [vmem:[#allocation5 + $0x150] sm:$0xff]  }
  0x45   :  { %1086 = vmatprep.subr.bf16.mxu1 %v1254_v13  ;;  %v988_v38 = vcombine.low %v61_v34, %v65_v37  ;;  %v989_v39 = vcombine.high %v61_v34, %v65_v37  ;;  %659 = vmatprep.mubr.bf16.mxu0 %v987_v36  ;;  %v1274_v41 = vld [vmem:[#allocation5 + $0x1c0] sm:$0xff]   ;;  %v1277_v44 = vld [vmem:[#allocation5 + $0x148] sm:$0xff]   ;;  %v1282_v49 = vld [vmem:[#allocation5 + $0x1d0] sm:$0xff]   ;;  %v1500_v37 = vand.u32 127, %v791_v33 }
  0x46   :  { %v1275_v42 = vld [vmem:[#allocation5 + $0x100] sm:$0xff]   ;;  %v1278_v45 = vld [vmem:[#allocation5 + $0x1c8] sm:$0xff]   ;;  %v1283_v50 = vld [vmem:[#allocation5 + $0x110] sm:$0xff]  }
  0x47   :  { %1065 = vmatpush3.bf16.msra.mxu0 %v1255_v14  ;;  %700 = vmatprep.mubr.bf16.mxu1 %v989_v39  ;;  %v1276_v43 = vld [vmem:[#allocation5 + $0x180] sm:$0xff]   ;;  %v1279_v46 = vld [vmem:[#allocation5 + $0x108] sm:$0xff]   ;;  %v1284_v51 = vld [vmem:[#allocation5 + $0x190] sm:$0xff]   ;;  %vm794_vm0 = vcmp.lt.s32.totalorder %v1500_v37, 8  ;;  %vm820_vm1 = vcmp.ge.s32.totalorder %v1500_v37, 8  ;;  %vm821_vm2 = vcmp.lt.s32.totalorder %v1500_v37, 16 }
  0x48   :  { %1087 = vmatpush3.bf16.msra.mxu1 %v1256_v15  ;;  %1066 = vmatprep.subr.bf16.mxu0 %v1257_v16  ;;  %v1280_v47 = vld [vmem:[#allocation5 + $0x188] sm:$0xff]   ;;  %v1285_v52 = vld [vmem:[#allocation5 + $0x158] sm:$0xff]   ;;  %v1289_v56 = vld [vmem:[#allocation5 + $0x160] sm:$0xff]   ;;  %vm847_vm4 = vcmp.ge.s32.totalorder %v1500_v37, 16  ;;  %vm848_vm5 = vcmp.lt.s32.totalorder %v1500_v37, 24 }
  0x49   :  { %1088 = vmatprep.subr.bf16.mxu1 %v1258_v17  ;;  %v1286_v53 = vld [vmem:[#allocation5 + $0x1d8] sm:$0xff]   ;;  %v1290_v57 = vld [vmem:[#allocation5 + $0x1e0] sm:$0xff]   ;;  %v1293_v60 = vld [vmem:[#allocation5 + $0x168] sm:$0xff]  }
  0x4a   :  { %v1287_v54 = vld [vmem:[#allocation5 + $0x118] sm:$0xff]   ;;  %v1291_v58 = vld [vmem:[#allocation5 + $0x120] sm:$0xff]   ;;  %v1294_v61 = vld [vmem:[#allocation5 + $0x1e8] sm:$0xff]  }
  0x4b   :  { %1067 = vmatpush3.bf16.msra.mxu0 %v1259_v18  ;;  %v1288_v55 = vld [vmem:[#allocation5 + $0x198] sm:$0xff]   ;;  %v1292_v59 = vld [vmem:[#allocation5 + $0x1a0] sm:$0xff]   ;;  %v1295_v62 = vld [vmem:[#allocation5 + $0x128] sm:$0xff]  }
  0x4c   :  { %1089 = vmatpush3.bf16.msra.mxu1 %v1260_v19  ;;  %1068 = vmatprep.subr.bf16.mxu0 %v1261_v20  ;;  %v1296_v63 = vld [vmem:[#allocation5 + $0x1a8] sm:$0xff]   ;;  %v1297_v0 = vld [vmem:[#allocation5 + $0x170] sm:$0xff]   ;;  %v1301_v4 = vld [vmem:[#allocation5 + $0x178] sm:$0xff]  }
  0x4d   :  { %1090 = vmatprep.subr.bf16.mxu1 %v1262_v21  ;;  %v1298_v1 = vld [vmem:[#allocation5 + $0x1f0] sm:$0xff]   ;;  %v1302_v5 = vld [vmem:[#allocation5 + $0x1f8] sm:$0xff]   ;;  %v985_v18 = vld [vmem:[%s1564_s2] ss:$0 sm:$0xff]  ;;  %s1432_s2 = smov [#allocation8]  }
  0x4e   :  { %v1299_v2 = vld [vmem:[#allocation5 + $0x130] sm:$0xff]   ;;  %v1303_v6 = vld [vmem:[#allocation5 + $0x138] sm:$0xff]   ;;  %vm1507_vm3 = vmand %vm820_vm1, %vm821_vm2  ;;  %s972_s30 = sshll.u32 %s1432_s2, 4  ;;  %s973_s30 = int_to_ptr.vmem [resolvable:$true] %s972_s30 }
  0x4f   :  { %1069 = vmatpush3.bf16.msra.mxu0 %v1263_v22  ;;  %v1300_v3 = vld [vmem:[#allocation5 + $0x1b0] sm:$0xff]   ;;  %v1304_v7 = vld [vmem:[#allocation5 + $0x1b8] sm:$0xff]   ;;  %vm1517_vm6 = vmand %vm847_vm4, %vm848_vm5  ;;  %s1395_s5 = scalar_lea.vmem %s973_s30, 256  ;;  %p1400_p11 = scmp.lt.s32.totalorder %s973_s30, %s973_s30 }
  0x50   :  { %1091 = vmatpush3.bf16.msra.mxu1 %v1264_v23  ;;  %1070 = vmatprep.subr.bf16.mxu0 %v1265_v24  ;;  %v62_v8 = vld [vmem:[#allocation2 + $0x10] sm:$0xff]  ;;  %v63_v12 = vld [vmem:[#allocation2 + $0x18] sm:$0xff]  ;;  %v882_v37 = vld [vmem:[#allocation7 + $0x40] sm:$0xff]  ;;  %p1396_p10 = scmp.ne.s32.totalorder %s973_s30, %s1395_s5  ;;  %p1401_p12 = scmp.lt.s32.totalorder %s1395_s5, %s1395_s5 }
  0x51   :  { %1092 = vmatprep.subr.bf16.mxu1 %v1266_v25  ;;  %v66_v9 = vld [vmem:[#allocation2 + $0x30] sm:$0xff]  ;;  %v67_v13 = vld [vmem:[#allocation2 + $0x38] sm:$0xff] }
  0x52   :  { %v990_v10 = vcombine.low %v62_v8, %v66_v9  ;;  %v991_v11 = vcombine.high %v62_v8, %v66_v9  ;;  %v992_v14 = vcombine.low %v63_v12, %v67_v13  ;;  %v993_v15 = vcombine.high %v63_v12, %v67_v13  ;;  %p1402_p13 = por %p1401_p12, %p1400_p11 }
  0x53   :  { %1071 = vmatpush3.bf16.msra.mxu0 %v1267_v26 }
  0x54   :  { %1093 = vmatpush3.bf16.msra.mxu1 %v1268_v27  ;;  %1072 = vmatprep.subr.bf16.mxu0 %v1269_v28  ;;  %p1403_p0 = pnand %p1402_p13, %p1396_p10 }
  0x55   :  { %1094 = vmatprep.subr.bf16.mxu1 %v1270_v29 }
  0x57   :  { %1073 = vmatpush3.bf16.msra.mxu0 %v1271_v30 }
  0x58   :  { %1095 = vmatpush3.bf16.msra.mxu1 %v1272_v31  ;;  %1102 = vmatprep.subr.bf16.mxu0 %v1273_v40 }
  0x59   :  { %1124 = vmatprep.subr.bf16.mxu1 %v1274_v41 }
  0x5a   :  { %660 = vmatmul.mubr.bf16.vlgmr.msra.gmra.mrb[0].mxu0 %v986_v35 }
  0x5b   :  { %701 = vmatmul.mubr.bf16.vlgmr.msra.gmra.mrb[0].mxu1 %v988_v38  ;;  %1103 = vmatpush3.bf16.msra.mxu0 %v1275_v42 }
  0x5c   :  { %1125 = vmatpush3.bf16.msra.mxu1 %v1276_v43  ;;  %1104 = vmatprep.subr.bf16.mxu0 %v1277_v44 }
  0x5d   :  { %1126 = vmatprep.subr.bf16.mxu1 %v1278_v45  ;;  %741 = vmatprep.mubr.bf16.mxu0 %v991_v11 }
  0x5e   :  { %782 = vmatprep.mubr.bf16.mxu1 %v993_v15 }
  0x5f   :  { %1105 = vmatpush3.bf16.msra.mxu0 %v1279_v46 }
  0x60   :  { %1127 = vmatpush3.bf16.msra.mxu1 %v1280_v47  ;;  %1106 = vmatprep.subr.bf16.mxu0 %v1281_v48 }
  0x61   :  { %1128 = vmatprep.subr.bf16.mxu1 %v1282_v49 }
  0x63   :  { %1107 = vmatpush3.bf16.msra.mxu0 %v1283_v50 }
  0x64   :  { %1129 = vmatpush3.bf16.msra.mxu1 %v1284_v51  ;;  %1108 = vmatprep.subr.bf16.mxu0 %v1285_v52 }
  0x65   :  { %1130 = vmatprep.subr.bf16.mxu1 %v1286_v53 }
  0x67   :  { %1109 = vmatpush3.bf16.msra.mxu0 %v1287_v54 }
  0x68   :  { %1131 = vmatpush3.bf16.msra.mxu1 %v1288_v55  ;;  %1110 = vmatprep.subr.bf16.mxu0 %v1289_v56 }
  0x69   :  { %1132 = vmatprep.subr.bf16.mxu1 %v1290_v57 }
  0x6b   :  { %1111 = vmatpush3.bf16.msra.mxu0 %v1291_v58 }
  0x6c   :  { %1133 = vmatpush3.bf16.msra.mxu1 %v1292_v59  ;;  %1112 = vmatprep.subr.bf16.mxu0 %v1293_v60  ;;  %v874_v59 = vld [vmem:[#allocation7] sm:$0xff]  ;;  %v875_v60 = vld [vmem:[#allocation7 + $0x8] sm:$0xff] }
  0x6d   :  { %1134 = vmatprep.subr.bf16.mxu1 %v1294_v61  ;;  %v876_v61 = vld [vmem:[#allocation7 + $0x10] sm:$0xff] }
  0x6f   :  { %1113 = vmatpush3.bf16.msra.mxu0 %v1295_v62  ;;  %v1199_v62 = vpack.c.bf16 %v875_v60, %v874_v59 }
  0x70   :  { %1135 = vmatpush3.bf16.msra.mxu1 %v1296_v63  ;;  %1114 = vmatprep.subr.bf16.mxu0 %v1297_v0  ;;  %v877_v63 = vld [vmem:[#allocation7 + $0x18] sm:$0xff] }
  0x71   :  { %1136 = vmatprep.subr.bf16.mxu1 %v1298_v1  ;;  %v1203_v0 = vpack.c.bf16 %v877_v63, %v876_v61 }
  0x73   :  { %1115 = vmatpush3.bf16.msra.mxu0 %v1299_v2 }
  0x74   :  { %1137 = vmatpush3.bf16.msra.mxu1 %v1300_v3  ;;  %1116 = vmatprep.subr.bf16.mxu0 %v1301_v4 }
  0x75   :  { %1138 = vmatprep.subr.bf16.mxu1 %v1302_v5 }
  0x77   :  { %1117 = vmatpush3.bf16.msra.mxu0 %v1303_v6 }
  0x78   :  { %1139 = vmatpush3.bf16.msra.mxu1 %v1304_v7  ;;  %1200 = vmatprep.subr.bf16.mxu0 %v1199_v62 }
  0x7a   :  { %742 = vmatmul.mubr.bf16.vlgmr.msra.gmra.mrb[4].mxu0 %v990_v10 }
  0x7b   :  { %783 = vmatmul.mubr.bf16.vlgmr.msra.gmra.mrb[4].mxu1 %v992_v14  ;;  %1202 = vmatpush3.bf16.msra.mxu0 %v1199_v62 }
  0x7c   :  { %1204 = vmatprep.subr.bf16.mxu0 %v1203_v0 }
  0x7f   :  { %1206 = vmatpush3.bf16.msra.mxu0 %v1203_v0 }
 0x12d   :  { %v1074_v16 = vpop.f32.mrb[0].mxu0 }
 0x12e   :  { %v1096_v17 = vpop.f32.mrb[0].mxu1  ;;  %v1075_v19 = vpop.f32.mrb[1].mxu0 }
 0x12f   :  { %v1076_v20 = vadd.f32 %v1075_v19, %v1074_v16  ;;  %v1097_v21 = vpop.f32.mrb[1].mxu1  ;;  %v1077_v22 = vpop.f32.mrb[2].mxu0 }
 0x130   :  { %v1098_v23 = vadd.f32 %v1097_v21, %v1096_v17  ;;  %v1099_v24 = vpop.f32.mrb[2].mxu1  ;;  %v1078_v25 = vpop.f32.mrb[3].mxu0 }
 0x131   :  { %v662_v26 = vadd.f32 %v1076_v20, %v985_v18  ;;  %v1079_v27 = vadd.f32 %v1078_v25, %v1077_v22  ;;  %v1100_v28 = vpop.f32.mrb[3].mxu1 }
 0x132   :  { %v1101_v29 = vadd.f32 %v1100_v28, %v1099_v24 }
 0x133   :  { %v703_v30 = vadd.f32 %v1098_v23, %v662_v26  ;;  %v665_v31 = vadd.f32 %v1079_v27, %v985_v18 }
 0x135   :  { %v706_v32 = vadd.f32 %v1101_v29, %v665_v31  ;;  %v878_v31 = vld [vmem:[#allocation7 + $0x20] sm:$0xff] }
 0x14d   :  { %v1118_v34 = vpop.f32.mrb[4].mxu0 }
 0x14e   :  { %v1140_v35 = vpop.f32.mrb[4].mxu1  ;;  %v1119_v36 = vpop.f32.mrb[5].mxu0 }
 0x14f   :  { %v1120_v38 = vadd.f32 %v1119_v36, %v1118_v34  ;;  %v1141_v39 = vpop.f32.mrb[5].mxu1  ;;  %v1121_v40 = vpop.f32.mrb[6].mxu0  ;;  %v880_v34 = vld [vmem:[#allocation7 + $0x30] sm:$0xff] }
 0x150   :  { %v1142_v41 = vadd.f32 %v1141_v39, %v1140_v35  ;;  %v1143_v42 = vpop.f32.mrb[6].mxu1  ;;  %v1122_v43 = vpop.f32.mrb[7].mxu0  ;;  %v881_v35 = vld [vmem:[#allocation7 + $0x38] sm:$0xff] }
 0x151   :  { %v744_v44 = vadd.f32 %v1120_v38, %v703_v30  ;;  %v1123_v45 = vadd.f32 %v1122_v43, %v1121_v40  ;;  %v1144_v46 = vpop.f32.mrb[7].mxu1  ;;  %v1211_v36 = vpack.c.bf16 %v881_v35, %v880_v34  ;;  %v883_v38 = vld [vmem:[#allocation7 + $0x48] sm:$0xff]  ;;  %v884_v40 = vld [vmem:[#allocation7 + $0x50] sm:$0xff] }
 0x152   :  { %v1145_v47 = vadd.f32 %v1144_v46, %v1143_v42  ;;  %v1215_v39 = vpack.c.bf16 %v883_v38, %v882_v37  ;;  %v886_v42 = vld [vmem:[#allocation7 + $0x60] sm:$0xff]  ;;  %v888_v46 = vld [vmem:[#allocation7 + $0x70] sm:$0xff] }
 0x153   :  { %v785_v48 = vadd.f32 %v1142_v41, %v744_v44  ;;  %v747_v49 = vadd.f32 %v1123_v45, %v706_v32  ;;  %v879_v32 = vld [vmem:[#allocation7 + $0x28] sm:$0xff]  ;;  %v885_v41 = vld [vmem:[#allocation7 + $0x58] sm:$0xff] }
 0x154   :  { %v1207_v33 = vpack.c.bf16 %v879_v32, %v878_v31  ;;  %v1219_v43 = vpack.c.bf16 %v885_v41, %v884_v40  ;;  %v887_v44 = vld [vmem:[#allocation7 + $0x68] sm:$0xff] }
 0x155   :  { %v788_v50 = vadd.f32 %v1145_v47, %v747_v49  ;;  %v796_v51 = vsel %vm794_vm0, %v785_v48, -1e+30  ;;  %v823_v54 = vsel %vm1507_vm3, %v785_v48, -1e+30  ;;  %v850_v57 = vsel %vm1517_vm6, %v785_v48, -1e+30 }
 0x156   :  { %798 = vmax.xlane.f32.xlu0 %v796_v51  ;;  %1208 = vmatprep.subr.bf16.mxu0 %v1207_v33  ;;  %v1223_v45 = vpack.c.bf16 %v887_v44, %v886_v42  ;;  %v889_v47 = vld [vmem:[#allocation7 + $0x78] sm:$0xff] }
 0x157   :  { %v797_v53 = vsel %vm794_vm0, %v788_v50, -1e+30  ;;  %v824_v56 = vsel %vm1507_vm3, %v788_v50, -1e+30  ;;  %v851_v58 = vsel %vm1517_vm6, %v788_v50, -1e+30  ;;  %1210 = vmatpush3.bf16.msra.mxu0 %v1207_v33 }
 0x158   :  { %800 = vmax.xlane.f32.xlu1 %v797_v53  ;;  %1212 = vmatprep.subr.bf16.mxu0 %v1211_v36 }
 0x15a   :  { %825 = vmax.xlane.f32.xlu0 %v823_v54 }
 0x15b   :  { %1214 = vmatpush3.bf16.msra.mxu0 %v1211_v36 }
 0x15c   :  { %827 = vmax.xlane.f32.xlu1 %v824_v56  ;;  %1216 = vmatprep.subr.bf16.mxu0 %v1215_v39 }
 0x15e   :  { %852 = vmax.xlane.f32.xlu0 %v850_v57 }
 0x15f   :  { %1218 = vmatpush3.bf16.msra.mxu0 %v1215_v39 }
 0x160   :  { %854 = vmax.xlane.f32.xlu1 %v851_v58  ;;  %1220 = vmatprep.subr.bf16.mxu0 %v1219_v43 }
 0x163   :  { %1222 = vmatpush3.bf16.msra.mxu0 %v1219_v43 }
 0x164   :  { %1224 = vmatprep.subr.bf16.mxu0 %v1223_v45 }
 0x167   :  { %1226 = vmatpush3.bf16.msra.mxu0 %v1223_v45 }
 0x1e3   :  { %v799_v1 = vpop.xlane.xlu0 %798 }
 0x1e4   :  { %v802_v2 = vsub.f32 %v785_v48, %v799_v1 }
 0x1e5   :  { %v801_v3 = vpop.xlane.xlu1 %800 }
 0x1e6   :  { %v804_v4 = vmul.f32 1.442695, %v802_v2  ;;  %v803_v5 = vsub.f32 %v788_v50, %v801_v3 }
 0x1e7   :  { %v826_v6 = vpop.xlane.xlu0 %825 }
 0x1e8   :  { %1305 = vpow2.f32 %v804_v4  ;;  %v806_v7 = vmul.f32 1.442695, %v803_v5  ;;  %v829_v8 = vsub.f32 %v785_v48, %v826_v6 }
 0x1e9   :  { %v828_v9 = vpop.xlane.xlu1 %827 }
 0x1ea   :  { %1307 = vpow2.f32 %v806_v7  ;;  %v831_v10 = vmul.f32 1.442695, %v829_v8  ;;  %v830_v11 = vsub.f32 %v788_v50, %v828_v9 }
 0x1eb   :  { %v853_v12 = vpop.xlane.xlu0 %852 }
 0x1ec   :  { %1309 = vpow2.f32 %v831_v10  ;;  %v833_v13 = vmul.f32 1.442695, %v830_v11  ;;  %v856_v14 = vsub.f32 %v785_v48, %v853_v12  ;;  %v1227_v48 = vpack.c.bf16 %v889_v47, %v888_v46 }
 0x1ed   :  { %v855_v15 = vpop.xlane.xlu1 %854 }
 0x1ee   :  { %1311 = vpow2.f32 %v833_v13  ;;  %v858_v16 = vmul.f32 1.442695, %v856_v14  ;;  %v857_v17 = vsub.f32 %v788_v50, %v855_v15  ;;  %1228 = vmatprep.subr.bf16.mxu0 %v1227_v48 }
 0x1ef   :  { %1230 = vmatpush3.bf16.msra.mxu0 %v1227_v48 }
 0x1f0   :  { %1313 = vpow2.f32 %v858_v16  ;;  %v860_v18 = vmul.f32 1.442695, %v857_v17 }
 0x1f2   :  { %v1306_v19 = vpop.eup %1305  ;;  %1315 = vpow2.f32 %v860_v18 }
 0x1f3   :  { %v1529_v20 = vsel %vm794_vm0, %v1306_v19, 0.0 }
 0x1f4   :  { %v1308_v21 = vpop.eup %1307  ;;  %810 = vadd.xlane.f32.xlu0 %v1529_v20 }
 0x1f5   :  { %v1534_v23 = vsel %vm794_vm0, %v1308_v21, 0.0 }
 0x1f6   :  { %v1310_v22 = vpop.eup %1309 }
 0x1f7   :  { %v835_v24 = vsel %vm1507_vm3, %v1310_v22, 0.0 }
 0x1f8   :  { %v1312_v25 = vpop.eup %1311  ;;  %812 = vadd.xlane.f32.xlu0 %v1534_v23  ;;  %837 = vadd.xlane.f32.xlu1 %v835_v24 }
 0x1f9   :  { %v836_v27 = vsel %vm1507_vm3, %v1312_v25, 0.0 }
 0x1fa   :  { %v1314_v26 = vpop.eup %1313 }
 0x1fb   :  { %v862_v28 = vsel %vm1517_vm6, %v1314_v26, 0.0 }
 0x1fc   :  { %v1316_v29 = vpop.eup %1315  ;;  %839 = vadd.xlane.f32.xlu1 %v836_v27  ;;  %864 = vadd.xlane.f32.xlu0 %v862_v28 }
 0x1fd   :  { %v863_v30 = vsel %vm1517_vm6, %v1316_v29, 0.0 }
 0x200   :  { %866 = vadd.xlane.f32.xlu1 %v863_v30 }
 0x281   :  { %v811_v49 = vpop.xlane.xlu0 %810 }
 0x285   :  { %v838_v50 = vpop.xlane.xlu1 %837  ;;  %v813_v51 = vpop.xlane.xlu0 %812 }
 0x286   :  { %1317 = vrcp.f32 %v838_v50 }
 0x287   :  { %1319 = vrcp.f32 %v811_v49 }
 0x288   :  { %1321 = vrcp.f32 %v813_v51 }
 0x289   :  { %v840_v52 = vpop.xlane.xlu1 %839  ;;  %v865_v53 = vpop.xlane.xlu0 %864 }
 0x28a   :  { %1323 = vrcp.f32 %v840_v52 }
 0x28b   :  { %1325 = vrcp.f32 %v865_v53 }
 0x28d   :  { %v867_v54 = vpop.xlane.xlu1 %866 }
 0x28e   :  { %1327 = vrcp.f32 %v867_v54 }
 0x290   :  { %v1318_v55 = vpop.eup %1317 }
 0x291   :  { %v1320_v56 = vpop.eup %1319  ;;  %v843_v57 = vmul.f32 %v1318_v55, %v835_v24 }
 0x292   :  { %v1322_v58 = vpop.eup %1321  ;;  %v816_v60 = vmul.f32 %v1320_v56, %v1529_v20 }
 0x293   :  { %v817_v1 = vmul.f32 %v1322_v58, %v1534_v23 }
 0x294   :  { %v1324_v59 = vpop.eup %1323  ;;  %v845_v63 = vadd.f32 %v843_v57, %v816_v60 }
 0x295   :  { %v1326_v61 = vpop.eup %1325  ;;  %v844_v62 = vmul.f32 %v1324_v59, %v836_v27 }
 0x296   :  { %v870_v0 = vmul.f32 %v1326_v61, %v862_v28 }
 0x297   :  { %v846_v4 = vadd.f32 %v844_v62, %v817_v1 }
 0x298   :  { %v1328_v2 = vpop.eup %1327  ;;  %v872_v3 = vadd.f32 %v870_v0, %v845_v63 }
 0x299   :  { %v871_v5 = vmul.f32 %v1328_v2, %v863_v30 }
 0x29a   :  { %1196 = vmatprep.mubr.f32.mxu0 %v872_v3 }
 0x29b   :  { %v873_v6 = vadd.f32 %v871_v5, %v846_v4 }
 0x29d   :  { %1197 = vmatmul.mubr.f32.vlgmr.msra.gmra.mrb[8].mxu0 %v873_v6 }
 0x370   :  { %v1198_v7 = vpop.f32.mrb[8].mxu0 }
 0x371   :  { %966 = vst [vmem:[#allocation8 + $0x8] sm:$0xff] %v1198_v7  ;;  %v956_v8 = vpop.f32.mrb[9].mxu0 }
 0x372   :  { %965 = vst [vmem:[#allocation8] sm:$0xff] %v956_v8 }
 0x373   :  { %1406 = shalt.err (!%p1403_p0)
}
 0x374   :  { %s1407_s8 = scalar_lea.hbm %s1566_s4, 256 }
 0x375   :  { %p1408_p1 = scmp.ne.s32.totalorder %s1566_s4, %s1407_s8  ;;  %p1411_p2 = scmp.lt.u32.totalorder %s1407_s8, %s1566_s4 }
 0x377   :  { %p1413_p3 = pnand %p1411_p2, %p1408_p1 }
 0x379   :  { %1416 = shalt.err (!%p1413_p3)
}
 0x37a   :  { %978 = dma.vmem_to_hbm [thread:$0]  %s973_s30, 256, %s1566_s4, [#allocation4], %s1430_s0, %s1430_s0, %s1431_s26  }
 0x37b   :  { %1421 = dma.done.wait [#allocation4], 256  }
 0x37c   :  { %1422 = vsyncadd [#allocation4], 4294967040 }
 0x37d   :  { %982 = vsyncpa [#allocation3], 1 }
 0x37e   :  { %983 = vsyncpa [#allocation6], 1 }
 0x37f   :  { %984 = vsyncpa [#allocation4], 1 }

</bundles_post_ra>
